<compile_context>
chip_gen: v5e
topology: v5e:2x2
jax: 0.10.0
libtpu: 0.0.40
codegen_flags: <defaults>
</compile_context>

<pallas_src>
import jax
import jax.numpy as jnp
from jax.experimental import pallas as pl
from jax.experimental.pallas import tpu as pltpu


def sampling_policy_kernel(x_ref, wq_ref, bq_ref, w1_ref, b1_ref, w2_ref, b2_ref,
                           out_ref):
    x = x_ref[...]                                   # [TB, S, E]  (VMEM)
    wq = wq_ref[...]                                 # [1, E]      (VMEM, resident)
    bq = bq_ref[0]                                   # scalar      (SMEM)

    # --- attention pooling: VPU multiply + XLU reduces (no MXU matvecs) -------
    # Squeezed [TB, S] softmax layout: S sits on lanes, so 8 batch rows pack
    # into one vreg and the max/exp/sum/recip run dense on the VPU/EUP/XLU.
    scores = jnp.sum(x * wq, axis=-1) + bq                         # [TB, S]
    m = jnp.max(scores, axis=-1, keepdims=True)                    # [TB, 1]
    e = jnp.exp(scores - m)                                        # [TB, S]
    denom = jnp.sum(e, axis=-1, keepdims=True)                     # [TB, 1]
    # Exact reciprocal: approx=True (EUP vrcp) may exceed the 1e-5 tolerance.
    attn = e * pl.reciprocal(denom, approx=False)                  # [TB, S]
    # pooled[b, e] = sum_s attn[b, s] * x[b, s, e]   (sublane reduce over S)
    pooled = jnp.sum(attn[..., None] * x, axis=1)                  # [TB, E]

    # --- MLP head (MXU, f32 accumulation) -------------------------------------
    h = jnp.dot(pooled, w1_ref[...],
                preferred_element_type=jnp.float32) + b1_ref[...]  # [TB, H]
    h = jnp.maximum(h, 0.0)
    logits = jnp.dot(h, w2_ref[...],
                     preferred_element_type=jnp.float32)           # [TB, 2]

    # Epilogue on the full [TB, 2] tile:
    #   col 0 -> temperature = sigmoid(logit + b2[0]) * 2.0
    #   col 1 -> top_p       = 0.8 + sigmoid(logit + b2[1]) * 0.2
    lane = jax.lax.broadcasted_iota(jnp.int32, logits.shape, 1)    # [TB, 2]
    is_temp = lane == 0
    b2v = jnp.where(is_temp, b2_ref[0], b2_ref[1])                 # SMEM scalars
    sig = jax.nn.sigmoid(logits + b2v)
    out_ref[...] = jnp.where(is_temp, sig * 2.0, 0.8 + sig * 0.2)


# 48 MiB: leaves headroom under v7x's 64 MiB physical VMEM and is well under
# v5e/v6e's 128 MiB; set explicitly so the 16/32 MiB default scoped limit never
# silently constrains the tile.
_VMEM_LIMIT_BYTES = 48 << 20
# x-stream slots: 2 pipeline buffers + ~3 in-body f32 temporaries of the same
# [TB, S, E] shape (x*wq, attn*x, ...).
_X_SLOTS = 5


def _pick_batch_tile(B, S, E, H):
    weight_bytes = 4 * (E + E * H + H + 2 * H)                 # wq + w1 + b1 + w2
    x_budget = _VMEM_LIMIT_BYTES - 2 * weight_bytes - (1 << 20)  # 1 MiB slack
    row_bytes = 4 * S * E
    tb_vmem = max(1, x_budget // (_X_SLOTS * row_bytes))
    # Megacore (v7x): give the "parallel" batch axis >= 2 grid steps when there
    # is enough work to be worth splitting.
    tb_target = -(-B // 2) if B >= 16 else B
    tb = min(B, tb_vmem, tb_target)
    # Layout rule for the (tb, 2) output block: tb == B or tb % 8 == 0.
    if tb != B:
        tb = max(8, (tb // 8) * 8)
        if tb >= B:
            tb = B
    return tb


def sampling_policy(x, wq, bq, w1, b1, w2, b2, *, batch_tile=None):
    B, S, E = x.shape
    H = w1.shape[1]

    # Layout plumbing (free reshapes in the wrapper):
    wq_row = wq.reshape(1, E)      # [E, 1] -> [1, E] so it broadcasts over lanes
    b1_row = b1.reshape(1, H)
    bq_flat = bq.reshape(-1)       # (1,) scalar in SMEM
    b2_flat = b2.reshape(-1)       # (2,) scalars in SMEM

    tb = batch_tile if batch_tile is not None else _pick_batch_tile(B, S, E, H)
    grid = (pl.cdiv(B, tb),)

    # TODO(synk): at decode-sized B (~2) this call is launch/weight-DMA bound;
    # keep w1/w2 resident across calls (cross-pallas_call futures) or fuse this
    # head into the surrounding decode kernel instead of tuning the body.
    out = pl.pallas_call(
        sampling_policy_kernel,
        out_shape=jax.ShapeDtypeStruct((B, 2), jnp.float32),
        grid_spec=pltpu.PrefetchScalarGridSpec(
            num_scalar_prefetch=0,
            grid=grid,
            in_specs=[
                pl.BlockSpec((tb, S, E), lambda i: (i, 0, 0)),           # x: batch-tiled stream
                pl.BlockSpec((1, E), lambda i: (0, 0)),                  # wq: VMEM resident
                pl.BlockSpec(memory_space=pltpu.MemorySpace.SMEM),       # bq scalar
                pl.BlockSpec((E, H), lambda i: (0, 0)),                  # w1: VMEM resident
                pl.BlockSpec((1, H), lambda i: (0, 0)),                  # b1: VMEM resident
                pl.BlockSpec((H, 2), lambda i: (0, 0)),                  # w2: VMEM resident
                pl.BlockSpec(memory_space=pltpu.MemorySpace.SMEM),       # b2 scalars
            ],
            out_specs=pl.BlockSpec((tb, 2), lambda i: (i, 0)),
        ),
        compiler_params=pltpu.CompilerParams(
            dimension_semantics=("parallel",),   # shard batch across TCs (v7x)
            vmem_limit_bytes=_VMEM_LIMIT_BYTES,
        ),
    )(x, wq_row, bq_flat, w1, b1_row, w2, b2_flat)

    return out[:, 0], out[:, 1]


def reference(x, wq, bq, w1, b1, w2, b2):
    scores = jnp.einsum("bse,eo->bso", x, wq) + bq[0, 0]
    attn = jax.nn.softmax(scores, axis=1)
    pooled = jnp.sum(attn * x, axis=1)
    h = jax.nn.relu(pooled @ w1 + b1)
    out = h @ w2 + b2
    return jax.nn.sigmoid(out[:, 0]) * 2.0, 0.8 + jax.nn.sigmoid(out[:, 1]) * 0.2


if __name__ == "__main__":
    B, S, E, H = 2, 8, 256, 128

    key = jax.random.PRNGKey(0)
    kx, kwq, kbq, kw1, kb1, kw2, kb2 = jax.random.split(key, 7)

    x = jax.random.normal(kx, (B, S, E), dtype=jnp.float32)

    # Deterministic synthetic parameters (shapes follow the nn.Module).
    wq = jax.random.normal(kwq, (E, 1), dtype=jnp.float32) * 0.05
    bq = jax.random.normal(kbq, (1, 1), dtype=jnp.float32) * 0.05
    w1 = jax.random.normal(kw1, (E, H), dtype=jnp.float32) * 0.05
    b1 = jax.random.normal(kb1, (H,), dtype=jnp.float32) * 0.05
    w2 = jax.random.normal(kw2, (H, 2), dtype=jnp.float32) * 0.05
    b2 = jax.random.normal(kb2, (2,), dtype=jnp.float32) * 0.05

    temperature, top_p = sampling_policy(x, wq, bq, w1, b1, w2, b2)
    jax.block_until_ready((temperature, top_p))

    ref_t, ref_p = reference(x, wq, bq, w1, b1, w2, b2)
    assert temperature.shape == (B,) and top_p.shape == (B,)
    assert jnp.allclose(temperature, ref_t, atol=1e-5, rtol=1e-5)
    assert jnp.allclose(top_p, ref_p, atol=1e-5, rtol=1e-5)

    print("KERNEL_OK")
</pallas_src>

<mosaic_0001>
module attributes {stable_mosaic.version = 11 : i64} {
  func.func @sampling_policy_kernel(%arg0: i32, %arg1: memref<2x8x256xf32, #tpu.memory_space<vmem>>, %arg2: memref<1x256xf32, #tpu.memory_space<vmem>>, %arg3: memref<1xf32, #tpu.memory_space<smem>>, %arg4: memref<256x128xf32, #tpu.memory_space<vmem>>, %arg5: memref<1x128xf32, #tpu.memory_space<vmem>>, %arg6: memref<128x2xf32, #tpu.memory_space<vmem>>, %arg7: memref<2xf32, #tpu.memory_space<smem>>, %arg8: memref<2x2xf32, #tpu.memory_space<vmem>>) attributes {dimension_semantics = [#tpu.dimension_semantics<parallel>], iteration_bounds = array<i64: 1>, scalar_prefetch = 0 : i64, scratch_operands = 0 : i64, tpu.core_type = #tpu.core_type<tc>, window_params = [{transform_indices = @transform_0, window_bounds = array<i64: 2, 8, 256>}, {pipeline_mode = #tpu.pipeline_mode<synchronous>, transform_indices = @transform_1, window_bounds = array<i64: 1, 256>}, {transform_indices = @transform_2, window_bounds = array<i64: 1>}, {pipeline_mode = #tpu.pipeline_mode<synchronous>, transform_indices = @transform_3, window_bounds = array<i64: 256, 128>}, {pipeline_mode = #tpu.pipeline_mode<synchronous>, transform_indices = @transform_4, window_bounds = array<i64: 1, 128>}, {pipeline_mode = #tpu.pipeline_mode<synchronous>, transform_indices = @transform_5, window_bounds = array<i64: 128, 2>}, {transform_indices = @transform_6, window_bounds = array<i64: 2>}, {transform_indices = @transform_7, window_bounds = array<i64: 2, 2>}]} {
    %c0 = arith.constant 0 : index
    %c0_0 = arith.constant 0 : index
    %c0_1 = arith.constant 0 : index
    %0 = vector.load %arg1[%c0, %c0_0, %c0_1] : memref<2x8x256xf32, #tpu.memory_space<vmem>>, vector<2x8x256xf32>
    %c0_2 = arith.constant 0 : index
    %c0_3 = arith.constant 0 : index
    %1 = vector.load %arg2[%c0_2, %c0_3] : memref<1x256xf32, #tpu.memory_space<vmem>>, vector<1x256xf32>
    %c0_4 = arith.constant 0 : index
    %2 = memref.load %arg3[%c0_4] : memref<1xf32, #tpu.memory_space<smem>>
    %3 = vector.shape_cast %1 : vector<1x256xf32> to vector<1x1x256xf32>
    %4 = vector.broadcast %3 : vector<1x1x256xf32> to vector<2x8x256xf32>
    %5 = arith.mulf %0, %4 : vector<2x8x256xf32>
    %cst = arith.constant dense<0.000000e+00> : vector<2x8xf32>
    %6 = vector.multi_reduction <add>, %5, %cst [2] : vector<2x8x256xf32> to vector<2x8xf32>
    %7 = vector.broadcast %2 : f32 to vector<2x8xf32>
    %8 = arith.addf %6, %7 : vector<2x8xf32>
    %cst_5 = arith.constant dense<0xFF800000> : vector<2xf32>
    %9 = vector.multi_reduction <maximumf>, %8, %cst_5 [1] : vector<2x8xf32> to vector<2xf32>
    %10 = vector.shape_cast %9 : vector<2xf32> to vector<2x1xf32>
    %11 = vector.broadcast %10 : vector<2x1xf32> to vector<2x8xf32>
    %12 = arith.subf %8, %11 : vector<2x8xf32>
    %13 = math.exp %12 : vector<2x8xf32>
    %cst_6 = arith.constant dense<0.000000e+00> : vector<2xf32>
    %14 = vector.multi_reduction <add>, %13, %cst_6 [1] : vector<2x8xf32> to vector<2xf32>
    %15 = vector.shape_cast %14 : vector<2xf32> to vector<2x1xf32>
    %16 = tpu.reciprocal %15 : vector<2x1xf32> -> vector<2x1xf32>
    %17 = vector.broadcast %16 : vector<2x1xf32> to vector<2x8xf32>
    %18 = arith.mulf %13, %17 : vector<2x8xf32>
    %19 = vector.shape_cast %18 : vector<2x8xf32> to vector<2x8x1xf32>
    %20 = vector.broadcast %19 : vector<2x8x1xf32> to vector<2x8x256xf32>
    %21 = arith.mulf %20, %0 : vector<2x8x256xf32>
    %cst_7 = arith.constant dense<0.000000e+00> : vector<2x256xf32>
    %22 = vector.multi_reduction <add>, %21, %cst_7 [1] : vector<2x8x256xf32> to vector<2x256xf32>
    %c0_8 = arith.constant 0 : index
    %c0_9 = arith.constant 0 : index
    %23 = vector.load %arg4[%c0_8, %c0_9] : memref<256x128xf32, #tpu.memory_space<vmem>>, vector<256x128xf32>
    %cst_10 = arith.constant dense<0.000000e+00> : vector<2x128xf32>
    %24 = tpu.matmul %22, %23, %cst_10 {dimension_numbers = #tpu.dot_dimension_numbers<[1], [0], [0], [1], [0, 0, 1, 1], [], []>} : vector<2x256xf32>, vector<256x128xf32>, vector<2x128xf32> -> vector<2x128xf32>
    %c0_11 = arith.constant 0 : index
    %c0_12 = arith.constant 0 : index
    %25 = vector.load %arg5[%c0_11, %c0_12] : memref<1x128xf32, #tpu.memory_space<vmem>>, vector<1x128xf32>
    %26 = vector.broadcast %25 : vector<1x128xf32> to vector<2x128xf32>
    %27 = arith.addf %24, %26 : vector<2x128xf32>
    %cst_13 = arith.constant 0.000000e+00 : f32
    %28 = vector.broadcast %cst_13 : f32 to vector<2x128xf32>
    %29 = arith.maximumf %27, %28 : vector<2x128xf32>
    %c0_14 = arith.constant 0 : index
    %c0_15 = arith.constant 0 : index
    %30 = vector.load %arg6[%c0_14, %c0_15] : memref<128x2xf32, #tpu.memory_space<vmem>>, vector<128x2xf32>
    %cst_16 = arith.constant dense<0.000000e+00> : vector<2x2xf32>
    %31 = tpu.matmul %29, %30, %cst_16 {dimension_numbers = #tpu.dot_dimension_numbers<[1], [0], [0], [1], [0, 0, 1, 1], [], []>} : vector<2x128xf32>, vector<128x2xf32>, vector<2x2xf32> -> vector<2x2xf32>
    %32 = tpu.iota {dimensions = array<i32: 1>} : vector<2x2xi32>
    %c0_i32 = arith.constant 0 : i32
    %33 = vector.broadcast %c0_i32 : i32 to vector<2x2xi32>
    %34 = arith.cmpi eq, %32, %33 : vector<2x2xi32>
    %c0_17 = arith.constant 0 : index
    %35 = memref.load %arg7[%c0_17] : memref<2xf32, #tpu.memory_space<smem>>
    %c1 = arith.constant 1 : index
    %36 = memref.load %arg7[%c1] : memref<2xf32, #tpu.memory_space<smem>>
    %37 = vector.broadcast %35 : f32 to vector<2x2xf32>
    %38 = vector.broadcast %36 : f32 to vector<2x2xf32>
    %39 = arith.select %34, %37, %38 : vector<2x2xi1>, vector<2x2xf32>
    %40 = arith.addf %31, %39 : vector<2x2xf32>
    %41 = arith.negf %40 : vector<2x2xf32>
    %42 = math.exp %41 : vector<2x2xf32>
    %cst_18 = arith.constant 1.000000e+00 : f32
    %43 = vector.broadcast %cst_18 : f32 to vector<2x2xf32>
    %44 = arith.addf %43, %42 : vector<2x2xf32>
    %45 = arith.divf %43, %44 : vector<2x2xf32>
    %cst_19 = arith.constant 2.000000e+00 : f32
    %46 = vector.broadcast %cst_19 : f32 to vector<2x2xf32>
    %47 = arith.mulf %45, %46 : vector<2x2xf32>
    %cst_20 = arith.constant 2.000000e-01 : f32
    %48 = vector.broadcast %cst_20 : f32 to vector<2x2xf32>
    %49 = arith.mulf %45, %48 : vector<2x2xf32>
    %cst_21 = arith.constant 8.000000e-01 : f32
    %50 = vector.broadcast %cst_21 : f32 to vector<2x2xf32>
    %51 = arith.addf %50, %49 : vector<2x2xf32>
    %52 = arith.select %34, %47, %51 : vector<2x2xi1>, vector<2x2xf32>
    %c0_22 = arith.constant 0 : index
    %c0_23 = arith.constant 0 : index
    %53 = vector.load %arg8[%c0_22, %c0_23] : memref<2x2xf32, #tpu.memory_space<vmem>>, vector<2x2xf32>
    tpu.vector_store %arg8[%c0_22, %c0_23], %52 {strides = array<i32>} : memref<2x2xf32, #tpu.memory_space<vmem>>, vector<2x2xf32>,
    return
  }
  func.func @transform_0(%arg0: i32) -> (i32, i32, i32) {
    %c0_i32 = arith.constant 0 : i32
    %c0_i32_0 = arith.constant 0 : i32
    %c0_i32_1 = arith.constant 0 : i32
    return %arg0, %c0_i32, %c0_i32_0 : i32, i32, i32
  }
  func.func @transform_1(%arg0: i32) -> (i32, i32) {
    %c0_i32 = arith.constant 0 : i32
    %c0_i32_0 = arith.constant 0 : i32
    %c0_i32_1 = arith.constant 0 : i32
    return %c0_i32, %c0_i32_0 : i32, i32
  }
  func.func @transform_2(%arg0: i32) -> i32 {
    %c0_i32 = arith.constant 0 : i32
    %c0_i32_0 = arith.constant 0 : i32
    return %c0_i32 : i32
  }
  func.func @transform_3(%arg0: i32) -> (i32, i32) {
    %c0_i32 = arith.constant 0 : i32
    %c0_i32_0 = arith.constant 0 : i32
    %c0_i32_1 = arith.constant 0 : i32
    return %c0_i32, %c0_i32_0 : i32, i32
  }
  func.func @transform_4(%arg0: i32) -> (i32, i32) {
    %c0_i32 = arith.constant 0 : i32
    %c0_i32_0 = arith.constant 0 : i32
    %c0_i32_1 = arith.constant 0 : i32
    return %c0_i32, %c0_i32_0 : i32, i32
  }
  func.func @transform_5(%arg0: i32) -> (i32, i32) {
    %c0_i32 = arith.constant 0 : i32
    %c0_i32_0 = arith.constant 0 : i32
    %c0_i32_1 = arith.constant 0 : i32
    return %c0_i32, %c0_i32_0 : i32, i32
  }
  func.func @transform_6(%arg0: i32) -> i32 {
    %c0_i32 = arith.constant 0 : i32
    %c0_i32_0 = arith.constant 0 : i32
    return %c0_i32 : i32
  }
  func.func @transform_7(%arg0: i32) -> (i32, i32) {
    %c0_i32 = arith.constant 0 : i32
    %c0_i32_0 = arith.constant 0 : i32
    return %arg0, %c0_i32 : i32, i32
  }
}

</mosaic_0001>

<bundles_post_ra>
// kernel: tpu_custom_call.1
= control target key start
LH: loop header
LB: loop body
LE: loop exit
PB: predicated region body
PF: predicated region fallthrough
CT: control target
= control target key end

     0   :  { %13 = vsyncpa [#allocation4], 0  ;;  %s594_s0 = inlined_call_operand.vmem [shape: f32[2,8,256], index: 0, kind: input, shape index: {}]   ;;  %s595_s1 = inlined_call_operand.vmem [shape: f32[1,256], index: 1, kind: input, shape index: {}]   ;;  %s596_s2 = inlined_call_operand.<no memory space> [shape: f32[1], index: 2, kind: input, shape index: {}]   ;;  %s597_s3 = inlined_call_operand.hbm [shape: f32[256,128], index: 3, kind: input, shape index: {}]   ;;  %s598_s4 = inlined_call_operand.vmem [shape: f32[1,128], index: 4, kind: input, shape index: {}]   ;;  %s599_s5 = inlined_call_operand.vmem [shape: f32[128,2], index: 5, kind: input, shape index: {}]   ;;  %s600_s6 = inlined_call_operand.vmem [shape: f32[2], index: 6, kind: input, shape index: {}]   ;;  %s601_s7 = inlined_call_operand.hbm [shape: f32[2,2], index: 7, kind: output, shape index: {}]  }
   0x1   :  { %14 = vsyncpa [#allocation6], 0 }
   0x2   :  { %15 = vsyncpa [#allocation5], 0  ;;  %s26_s26 = sshll.u32 %s597_s3, 4  ;;  %s437_s27 = smov [#allocation3]   ;;  %s27_s26 = int_to_ptr.hbm [resolvable:$true] %s26_s26 }
   0x3   :  { %s28_s28 = sshll.u32 %s437_s27, 4  ;;  %s44_s8 = sshll.u32 %s600_s6, 4  ;;  %s29_s28 = int_to_ptr.vmem [resolvable:$true] %s28_s28  ;;  %s45_s8 = int_to_ptr.vmem [resolvable:$true] %s44_s8 }
   0x4   :  { %s438_s9 = smov 128   ;;  %s439_s10 = smov 8  }
   0x5   :  { %34 = dma.hbm_to_vmem [thread:$0]  %s27_s26, 4096, %s29_s28, [#allocation4], %s438_s9, %s438_s9, %s439_s10  }
   0x6   :  { %s440_s11 = smov [#allocation7]  }
   0x7   :  { %47 = dma.vmem_to_smem %s45_s8, 16, %s440_s11, [#allocation6]  }
   0x8   :  { %431 = dma.done.wait [#allocation4], 4096  }
   0x9   :  { %432 = vsyncadd [#allocation4], 4294963200 }
   0xa   :  { %433 = dma.done.wait [#allocation6], 16  }
   0xb   :  { %434 = vsyncadd [#allocation6], 4294967280 }
   0xc   :  { %56 = sfence }
   0xd   :  { %v492_v0 = vld [vmem:[%s594_s0] sm:$0xff]  ;;  %v497_v1 = vld [vmem:[%s594_s0 + $0x8] sm:$0xff]  ;;  %v507_v7 = vld [vmem:[%s594_s0 + $0x10] sm:$0xff]  ;;  %v83_v14 = vlaneseq  ;;  %v78_v15 = vstv %s596_s2  ;;  %vm87_vm0 = vcmask 1041409   ;;  %vm90_vm1 = vcmask 58368   ;;  %s281_s25 = sld [smem:[#allocation7]] }
   0xe   :  { %v61_v2 = vld [vmem:[%s595_s1] sm:$0x3]  ;;  %v512_v8 = vld [vmem:[%s594_s0 + $0x18] sm:$0xff]  ;;  %v441_v24 = vmov 0   ;;  %v193_v42 = vld [vmem:[#allocation3 + $0x70] sm:$0xff]  ;;  %s349_s26 = sld [smem:[#allocation7 + $0x1]] }
   0xf   :  { %v64_v3 = vperm.slane %v61_v2, 0  ;;  %v65_v4 = vperm.slane %v61_v2, 1  ;;  %v519_v16 = vand.u32 127, %v83_v14  ;;  %358 = vset.pattern.permute.xlu2 %v441_v24  ;;  %357 = vset.pattern.permute.xlu1 %v441_v24  ;;  %v194_v40 = vld [vmem:[#allocation3 + $0x78] sm:$0xff]  ;;  %v209_v43 = vld [vmem:[#allocation3 + $0xf0] sm:$0xff]  ;;  %v192_v44 = vld [vmem:[#allocation3 + $0x68] sm:$0xff] }
  0x10   :  { %359 = vset.pattern.permute.xlu0 %v441_v24  ;;  %v210_v41 = vld [vmem:[#allocation3 + $0xf8] sm:$0xff]  ;;  %223 = vmatpush.msra.mxu0 %v194_v40  ;;  %v208_v45 = vld [vmem:[#allocation3 + $0xe8] sm:$0xff]  ;;  %v191_v46 = vld [vmem:[#allocation3 + $0x60] sm:$0xff]  ;;  %s338_s29 = sshll.u32 %s601_s7, 4  ;;  %vm329_vm11 = vcmask 9216   ;;  %s339_s29 = int_to_ptr.hbm [resolvable:$true] %s338_s29 }
  0x11   :  { %v68_v5 = vmul.f32 %v64_v3, %v492_v0  ;;  %v69_v6 = vmul.f32 %v65_v4, %v497_v1  ;;  %v70_v10 = vmul.f32 %v64_v3, %v507_v7  ;;  %v71_v11 = vmul.f32 %v65_v4, %v512_v8  ;;  %243 = vmatpush.msra.mxu1 %v210_v41  ;;  %v207_v47 = vld [vmem:[#allocation3 + $0xe0] sm:$0xff]  ;;  %v190_v48 = vld [vmem:[#allocation3 + $0x58] sm:$0xff]  ;;  %v189_v50 = vld [vmem:[#allocation3 + $0x50] sm:$0xff] }
  0x12   :  { %224 = vmatpush.msra.mxu0 %v193_v42  ;;  %v206_v49 = vld [vmem:[#allocation3 + $0xd8] sm:$0xff]  ;;  %v205_v51 = vld [vmem:[#allocation3 + $0xd0] sm:$0xff]  ;;  %v188_v53 = vld [vmem:[#allocation3 + $0x48] sm:$0xff]  ;;  %vm280_vm6 = vcmp.eq.s32.totalorder %v519_v16, 0 }
  0x13   :  { %v72_v9 = vadd.f32 %v69_v6, %v68_v5  ;;  %v75_v12 = vadd.f32 %v71_v11, %v70_v10  ;;  %244 = vmatpush.msra.mxu1 %v209_v43  ;;  %v204_v54 = vld [vmem:[#allocation3 + $0xc8] sm:$0xff]  ;;  %v187_v55 = vld [vmem:[#allocation3 + $0x40] sm:$0xff]  ;;  %v186_v11 = vld [vmem:[#allocation3 + $0x38] sm:$0xff] }
  0x14   :  { %225 = vmatpush.msra.mxu0 %v192_v44  ;;  %v203_v56 = vld [vmem:[#allocation3 + $0xc0] sm:$0xff]  ;;  %v201_v14 = vld [vmem:[#allocation3 + $0xb0] sm:$0xff]  ;;  %v180_v24 = vld [vmem:[#allocation3 + $0x8] sm:$0xff] }
  0x15   :  { %73 = vadd.xlane.f32.xlu0 %v72_v9  ;;  %245 = vmatpush.msra.mxu1 %v208_v45  ;;  %v269_v44 = vld [vmem:[%s599_s5 + $0x28] sm:$0xff] }
  0x16   :  { %226 = vmatpush.msra.mxu0 %v191_v46 }
  0x17   :  { %246 = vmatpush.msra.mxu1 %v207_v47 }
  0x18   :  { %227 = vmatpush.msra.mxu0 %v190_v48 }
  0x19   :  { %247 = vmatpush.msra.mxu1 %v206_v49 }
  0x1a   :  { %228 = vmatpush.msra.mxu0 %v189_v50 }
  0x1b   :  { %248 = vmatpush.msra.mxu1 %v205_v51 }
  0x1c   :  { %229 = vmatpush.msra.mxu0 %v188_v53 }
  0x1d   :  { %76 = vadd.xlane.f32.xlu0 %v75_v12  ;;  %249 = vmatpush.msra.mxu1 %v204_v54  ;;  %v202_v12 = vld [vmem:[#allocation3 + $0xb8] sm:$0xff] }
  0x1e   :  { %230 = vmatpush.msra.mxu0 %v187_v55 }
  0x1f   :  { %250 = vmatpush.msra.mxu1 %v203_v56 }
  0x20   :  { %231 = vmatpush.msra.mxu0 %v186_v11  ;;  %v264_v11 = vld [vmem:[%s599_s5] sm:$0xff] }
  0x21   :  { %251 = vmatpush.msra.mxu1 %v202_v12  ;;  %v360_v12 = vld [vmem:[%s598_s4] ss:$0 sm:$0xff]  ;;  %s442_s4 = smov [#allocation8]  }
  0x23   :  { %252 = vmatpush.msra.mxu1 %v201_v14 }
  0x88   :  { %v74_v13 = vpop.xlane.xlu0 %73 }
  0x89   :  { %v79_v17 = vadd.f32 %v78_v15, %v74_v13  ;;  %v185_v13 = vld [vmem:[#allocation3 + $0x30] sm:$0xff] }
  0x8a   :  { %232 = vmatpush.msra.mxu0 %v185_v13 }
  0x8b   :  { %v85_v20 = vperm.slane %v79_v17, %v519_v16 }
  0x90   :  { %v77_v18 = vpop.xlane.xlu0 %76 }
  0x91   :  { %v80_v19 = vadd.f32 %v78_v15, %v77_v18  ;;  %v184_v15 = vld [vmem:[#allocation3 + $0x28] sm:$0xff]  ;;  %v183_v18 = vld [vmem:[#allocation3 + $0x20] sm:$0xff] }
  0x92   :  { %233 = vmatpush.msra.mxu0 %v184_v15 }
  0x93   :  { %v86_v21 = vperm.slane %v80_v19, %v519_v16 }
  0x94   :  { %234 = vmatpush.msra.mxu0 %v183_v18 }
  0x95   :  { %v88_v22 = vsel %vm87_vm0, %v86_v21, %v85_v20  ;;  %v182_v20 = vld [vmem:[#allocation3 + $0x18] sm:$0xff] }
  0x96   :  { %v91_v23 = vsel %vm90_vm1, %v88_v22, -inf  ;;  %v198_v21 = vld [vmem:[#allocation3 + $0x98] sm:$0xff]  ;;  %235 = vmatpush.msra.mxu0 %v182_v20  ;;  %v181_v22 = vld [vmem:[#allocation3 + $0x10] sm:$0xff]  ;;  %v284_v20 = vstv %s349_s26 }
  0x97   :  { %92 = vmax.xlane.f32.xlu1 %v91_v23  ;;  %v197_v23 = vld [vmem:[#allocation3 + $0x90] sm:$0xff] }
  0x98   :  { %236 = vmatpush.msra.mxu0 %v181_v22 }
  0x9a   :  { %237 = vmatpush.msra.mxu0 %v180_v24 }
 0x10a   :  { %v93_v25 = vpop.xlane.xlu1 %92 }
 0x10b   :  { %v95_v26 = vperm.slane %v93_v25, 0  ;;  %v96_v27 = vperm.slane %v93_v25, 1  ;;  %v196_v25 = vld [vmem:[#allocation3 + $0x88] sm:$0xff] }
 0x10d   :  { %v99_v28 = vsub.f32 %v79_v17, %v95_v26  ;;  %v100_v29 = vsub.f32 %v80_v19, %v96_v27  ;;  %v200_v17 = vld [vmem:[#allocation3 + $0xa8] sm:$0xff]  ;;  %v199_v19 = vld [vmem:[#allocation3 + $0xa0] sm:$0xff] }
 0x10e   :  { %253 = vmatpush.msra.mxu1 %v200_v17  ;;  %v179_v26 = vld [vmem:[#allocation3] sm:$0xff] }
 0x10f   :  { %v101_v30 = vmul.f32 1.442695, %v99_v28  ;;  %v103_v31 = vmul.f32 1.442695, %v100_v29  ;;  %v195_v27 = vld [vmem:[#allocation3 + $0x80] sm:$0xff]  ;;  %238 = vmatpush.msra.mxu0 %v179_v26  ;;  %v279_v28 = vld [vmem:[%s599_s5 + $0x78] sm:$0xff] }
 0x110   :  { %254 = vmatpush.msra.mxu1 %v199_v19  ;;  %v278_v29 = vld [vmem:[%s599_s5 + $0x70] sm:$0xff]  ;;  %286 = vmatpush.msra.mxu2 %v279_v28  ;;  %v283_v19 = vstv %s281_s25 }
 0x111   :  { %361 = vpow2.f32 %v101_v30  ;;  %v277_v30 = vld [vmem:[%s599_s5 + $0x68] sm:$0xff] }
 0x112   :  { %363 = vpow2.f32 %v103_v31  ;;  %255 = vmatpush.msra.mxu1 %v198_v21  ;;  %287 = vmatpush.msra.mxu2 %v278_v29  ;;  %v276_v31 = vld [vmem:[%s599_s5 + $0x60] sm:$0xff]  ;;  %v285_v21 = vsel %vm280_vm6, %v283_v19, %v284_v20 }
 0x114   :  { %256 = vmatpush.msra.mxu1 %v197_v23  ;;  %288 = vmatpush.msra.mxu2 %v277_v30 }
 0x116   :  { %257 = vmatpush.msra.mxu1 %v196_v25  ;;  %289 = vmatpush.msra.mxu2 %v276_v31 }
 0x117   :  { %v362_v32 = vpop.eup %361 }
 0x118   :  { %v364_v33 = vpop.eup %363  ;;  %108 = vperm.xlu1 %357, %v362_v32   ;;  %258 = vmatpush.msra.mxu1 %v195_v27 }
 0x119   :  { %111 = vperm.xlu2 %358, %v364_v33  }
 0x173   :  { %v112_v34 = vpop.permute.xlu2 %111 }
 0x174   :  { %v114_v36 = vperm.slane %v112_v34, %v519_v16  ;;  %v273_v34 = vld [vmem:[%s599_s5 + $0x48] sm:$0xff] }
 0x18a   :  { %v109_v35 = vpop.permute.xlu1 %108 }
 0x18b   :  { %v113_v37 = vperm.slane %v109_v35, %v519_v16  ;;  %v272_v35 = vld [vmem:[%s599_s5 + $0x40] sm:$0xff] }
 0x18d   :  { %v115_v38 = vsel %vm87_vm0, %v114_v36, %v113_v37  ;;  %v271_v36 = vld [vmem:[%s599_s5 + $0x38] sm:$0xff] }
 0x18e   :  { %v117_v39 = vsel %vm90_vm1, %v115_v38, 0.0 }
 0x18f   :  { %118 = vadd.xlane.f32.xlu2 %v117_v39  ;;  %v270_v39 = vld [vmem:[%s599_s5 + $0x30] sm:$0xff] }
 0x202   :  { %v119_v52 = vpop.xlane.xlu2 %118 }
 0x203   :  { %365 = vrcp.f32 %v119_v52  ;;  %v131_v60 = vand.u32 2147483648, %v119_v52  ;;  %v129_v62 = vand.u32 2147483647, %v119_v52  ;;  %vm125_vm3 = vweird.f32 %v119_v52 }
 0x205   :  { %v132_v2 = vor.u32 1.1754944e-38, %v131_v60  ;;  %vm130_vm5 = vcmp.eq.f32.partialorder %v129_v62, 8.507059e+37 }
 0x209   :  { %v366_v57 = vpop.eup %365 }
 0x20a   :  { %v121_v58 = vmul.f32 %v366_v57, %v119_v52  ;;  %vm126_vm2 = vweird.f32 %v366_v57 }
 0x20b   :  { %vm127_vm4 = vmor %vm125_vm3, %vm126_vm2 }
 0x20c   :  { %v122_v59 = vsub.f32 1.0, %v121_v58 }
 0x20e   :  { %v123_v61 = vmul.f32 %v366_v57, %v122_v59 }
 0x210   :  { %v124_v63 = vadd.f32 %v366_v57, %v123_v61 }
 0x212   :  { %v128_v3 = vsel %vm127_vm4, %v366_v57, %v124_v63 }
 0x213   :  { %v133_v4 = vsel %vm130_vm5, %v132_v2, %v128_v3 }
 0x214   :  { %v136_v5 = vperm.slane %v133_v4, 1  ;;  %v135_v6 = vperm.slane %v133_v4, 0 }
 0x216   :  { %v140_v9 = vmul.f32 %v364_v33, %v136_v5  ;;  %v139_v10 = vmul.f32 %v362_v32, %v135_v6  ;;  %v275_v32 = vld [vmem:[%s599_s5 + $0x58] sm:$0xff]  ;;  %v274_v33 = vld [vmem:[%s599_s5 + $0x50] sm:$0xff] }
 0x217   :  { %290 = vmatpush.msra.mxu2 %v275_v32  ;;  %v267_v6 = vld [vmem:[%s599_s5 + $0x18] sm:$0xff] }
 0x218   :  { %148 = vperm.xlu1 %357, %v140_v9   ;;  %143 = vperm.xlu0 %359, %v139_v10   ;;  %v266_v9 = vld [vmem:[%s599_s5 + $0x10] sm:$0xff]  ;;  %v265_v10 = vld [vmem:[%s599_s5 + $0x8] sm:$0xff] }
 0x219   :  { %291 = vmatpush.msra.mxu2 %v274_v33 }
 0x21b   :  { %292 = vmatpush.msra.mxu2 %v273_v34 }
 0x21d   :  { %293 = vmatpush.msra.mxu2 %v272_v35 }
 0x21f   :  { %294 = vmatpush.msra.mxu2 %v271_v36 }
 0x221   :  { %295 = vmatpush.msra.mxu2 %v270_v39 }
 0x223   :  { %296 = vmatpush.msra.mxu2 %v269_v44 }
 0x28a   :  { %v149_v37 = vpop.permute.xlu1 %148  ;;  %v144_v38 = vpop.permute.xlu0 %143 }
 0x28b   :  { %v153_v40 = vmul.f32 %v149_v37, %v507_v7  ;;  %v154_v41 = vmul.f32 %v149_v37, %v512_v8  ;;  %v151_v42 = vmul.f32 %v144_v38, %v492_v0  ;;  %v152_v43 = vmul.f32 %v144_v38, %v497_v1  ;;  %v268_v7 = vld [vmem:[%s599_s5 + $0x20] sm:$0xff]  ;;  %s336_s5 = sshll.u32 %s442_s4, 4  ;;  %s337_s5 = int_to_ptr.vmem [resolvable:$true] %s336_s5 }
 0x28c   :  { %297 = vmatpush.msra.mxu2 %v268_v7 }
 0x28d   :  { %v167_v45 = vrot.slane %v153_v40, 4  ;;  %v173_v46 = vrot.slane %v154_v41, 4  ;;  %v155_v47 = vrot.slane %v151_v42, 4  ;;  %v161_v48 = vrot.slane %v152_v43, 4 }
 0x28e   :  { %298 = vmatpush.msra.mxu2 %v267_v6 }
 0x28f   :  { %v168_v49 = vadd.f32 %v167_v45, %v153_v40  ;;  %v174_v8 = vadd.f32 %v173_v46, %v154_v41  ;;  %v156_v50 = vadd.f32 %v155_v47, %v151_v42  ;;  %v162_v0 = vadd.f32 %v161_v48, %v152_v43 }
 0x290   :  { %299 = vmatpush.msra.mxu2 %v266_v9 }
 0x291   :  { %v169_v1 = vrot.slane %v168_v49, 2  ;;  %v175_v51 = vrot.slane %v174_v8, 2  ;;  %v157_v52 = vrot.slane %v156_v50, 2  ;;  %v163_v53 = vrot.slane %v162_v0, 2 }
 0x292   :  { %300 = vmatpush.msra.mxu2 %v265_v10 }
 0x293   :  { %v170_v54 = vadd.f32 %v169_v1, %v168_v49  ;;  %v176_v55 = vadd.f32 %v175_v51, %v174_v8  ;;  %v158_v56 = vadd.f32 %v157_v52, %v156_v50  ;;  %v164_v57 = vadd.f32 %v163_v53, %v162_v0 }
 0x294   :  { %301 = vmatpush.msra.mxu2 %v264_v11 }
 0x295   :  { %v171_v58 = vrot.slane %v170_v54, 1  ;;  %v177_v59 = vrot.slane %v176_v55, 1  ;;  %v159_v60 = vrot.slane %v158_v56, 1  ;;  %v165_v61 = vrot.slane %v164_v57, 1 }
 0x297   :  { %v160_v62 = vadd.f32 %v159_v60, %v158_v56  ;;  %v172_v63 = vadd.f32 %v171_v58, %v170_v54  ;;  %v166_v2 = vadd.f32 %v165_v61, %v164_v57  ;;  %v178_v3 = vadd.f32 %v177_v59, %v176_v55 }
 0x299   :  { %v219_v4 = vsel %vm87_vm0, %v172_v63, %v160_v62  ;;  %v220_v5 = vsel %vm87_vm0, %v178_v3, %v166_v2 }
 0x29a   :  { %239 = vmatmul.f32.vlgmr.msra.gmra.mxu0 %v219_v4  ;;  %259 = vmatmul.f32.vlgmr.msra.gmra.mxu1 %v220_v5 }
 0x317   :  { %v240_v13 = vpop.f32.mrf.mxu0  ;;  %v260_v15 = vpop.f32.mrf.mxu1 }
 0x318   :  { %v241_v14 = vadd.f32 %v360_v12, %v240_v13 }
 0x31a   :  { %v261_v17 = vadd.f32 %v260_v15, %v241_v14 }
 0x31c   :  { %v263_v18 = vmax.f32 %v261_v17, 0.0 }
 0x31e   :  { %302 = vmatmul.f32.vlgmr.msra.gmra.mxu2 %v263_v18 }
 0x3a1   :  { %v303_v22 = vpop.f32.mrf.mxu2 }
 0x3a2   :  { %v304_v23 = vadd.f32 %v303_v22, %v285_v21 }
 0x3a4   :  { %v350_v24 = vmul.f32 -1.442695, %v304_v23 }
 0x3a6   :  { %367 = vpow2.f32 %v350_v24 }
 0x3ac   :  { %v368_v25 = vpop.eup %367 }
 0x3ad   :  { %v309_v26 = vadd.f32 1.0, %v368_v25 }
 0x3af   :  { %369 = vrcp.f32 %v309_v26  ;;  %v321_v30 = vand.u32 2147483648, %v309_v26  ;;  %v319_v32 = vand.u32 2147483647, %v309_v26  ;;  %vm315_vm8 = vweird.f32 %v309_v26 }
 0x3b1   :  { %v322_v34 = vor.u32 1.1754944e-38, %v321_v30  ;;  %vm320_vm10 = vcmp.eq.f32.partialorder %v319_v32, 8.507059e+37 }
 0x3b5   :  { %v370_v27 = vpop.eup %369 }
 0x3b6   :  { %v311_v28 = vmul.f32 %v370_v27, %v309_v26  ;;  %vm316_vm7 = vweird.f32 %v370_v27 }
 0x3b7   :  { %vm317_vm9 = vmor %vm315_vm8, %vm316_vm7 }
 0x3b8   :  { %v312_v29 = vsub.f32 1.0, %v311_v28 }
 0x3ba   :  { %v313_v31 = vmul.f32 %v370_v27, %v312_v29 }
 0x3bc   :  { %v314_v33 = vadd.f32 %v370_v27, %v313_v31 }
 0x3be   :  { %v318_v35 = vsel %vm317_vm9, %v370_v27, %v314_v33 }
 0x3bf   :  { %v323_v36 = vsel %vm320_vm10, %v322_v34, %v318_v35 }
 0x3c0   :  { %v326_v37 = vmul.f32 0.2, %v323_v36  ;;  %v325_v38 = vmul.f32 2.0, %v323_v36 }
 0x3c2   :  { %v327_v39 = vadd.f32 0.8, %v326_v37 }
 0x3c4   :  { %v328_v40 = vsel %vm280_vm6, %v325_v38, %v327_v39 }
 0x3c5   :  { %330 = vst.msk [vmem:[#allocation8] sm:$0x3] %vm329_vm11, %v328_v40 }
 0x3c6   :  { %341 = dma.vmem_to_hbm [thread:$0]  %s337_s5, 32, %s339_s29, [#allocation5]  }
 0x3c7   :  { %435 = dma.done.wait [#allocation5], 32  }
 0x3c8   :  { %436 = vsyncadd [#allocation5], 4294967264 }
 0x3c9   :  { %346 = vsyncpa [#allocation4], 1 }
 0x3ca   :  { %347 = vsyncpa [#allocation5], 1 }
 0x3cb   :  { %348 = vsyncpa [#allocation6], 1 }

</bundles_post_ra>
